<compile_context>
chip_gen: v6e
topology: v6e:2x2x1
jax: 0.10.0
libtpu: 0.0.40
codegen_flags: <defaults>
</compile_context>

<pallas_src>
from dataclasses import dataclass
from functools import partial
from typing import List, Union

import numpy as np
import jax
import jax.numpy as jnp
from jax.experimental import pallas as pl
from jax.experimental.pallas import tpu as pltpu


# ----------------------------- vocabulary ---------------------------------
LABELS = ('-', '|', '<unk>', "'") + tuple("ABCDEFGHIJKLMNOPQRSTUVWXYZ") + ('<s>', '</s>')
VOCAB = len(LABELS)                      # 32
CHAR2IDX = {c: i for i, c in enumerate(LABELS)}
UNK_IDX = CHAR2IDX['<unk>']
BLANK_ID = 0
HOP = 128                                # samples per acoustic frame (feature dim)

V_PAD = 128                              # vocab padded to full lane width
L_PAD = 128                              # (L+1) token axis padded to full lane width
UNROLL = 8                               # DP rows packed per (8,128) store
NEG_LARGE = jnp.float32(-1e30)           # finite "-inf" for padded vocab columns


@dataclass
class Point:
    token_index: int
    time_index: int
    score: float


@dataclass
class Segment:
    label: str
    start: int
    end: int
    score: float

    @property
    def length(self) -> int:
        return self.end - self.start


def _round_up(x: int, m: int) -> int:
    return ((x + m - 1) // m) * m


# ----------------------------- Pallas kernels ------------------------------
def emission_kernel(x_ref, w_ref, b_ref, out_ref):
    # x: (TILE_T, HOP) bf16, w: (HOP, V_PAD) bf16, b: (1, V_PAD) f32
    # out: (TILE_T, V_PAD) f32 log-softmax.  Padded vocab columns carry a
    # -1e30 bias so the softmax normalizer ignores them (exp underflows to 0).
    logits = jnp.dot(x_ref[...], w_ref[...],
                     preferred_element_type=jnp.float32) + b_ref[...]
    m = jnp.max(logits, axis=-1, keepdims=True)
    z = logits - m
    lse = jnp.log(jnp.sum(jnp.exp(z), axis=-1, keepdims=True))
    out_ref[...] = z - lse


def trellis_kernel(em_ref, oh_ref, tr_ref, comb_ref, blank_ref, prev_ref):
    # em_ref : (TILE_T, V_PAD) log-probs for this T tile
    # oh_ref : (V_PAD, L_PAD) fused one-hot; col 0 = blank, cols 1..L = tokens
    # tr_ref : (TILE_T, L_PAD) output; row t holds trellis[t_global + 1]
    # comb_ref / blank_ref : (TILE_T, L_PAD) VMEM scratch
    # prev_ref : (1, L_PAD) VMEM scratch carrying the DP row across T tiles
    kt = pl.program_id(1)
    Tt, Lp = comb_ref.shape
    col = jax.lax.broadcasted_iota(jnp.int32, (1, Lp), 1)
    zeros_row = jnp.zeros((1, Lp), jnp.float32)

    # single MXU op: per-token emissions (col>=1) and blank emission (col 0)
    comb = jnp.dot(em_ref[...], oh_ref[...], preferred_element_type=jnp.float32)
    comb_ref[...] = comb
    # hoist the per-step lane broadcast of the blank column out of the DP loop
    blank_ref[...] = jnp.broadcast_to(comb[:, 0:1], (Tt, Lp))

    @pl.when(kt == 0)
    def _():
        prev_ref[...] = jnp.where(col == 0, zeros_row,
                                  jnp.full((1, Lp), -jnp.inf, jnp.float32))

    def block_body(blk, prev):
        base = pl.multiple_of(blk * UNROLL, UNROLL)
        rows = []
        cur = prev
        for u in range(UNROLL):
            row_blank = blank_ref[pl.ds(base + u, 1), :]      # (1, L_PAD)
            row_tok = comb_ref[pl.ds(base + u, 1), :]         # (1, L_PAD)
            shifted = pltpu.roll(cur, shift=1, axis=1)        # shifted[j] = prev[j-1]
            new_row = jnp.maximum(cur + row_blank, shifted + row_tok)
            new_row = jnp.where(col == 0, zeros_row, new_row)  # trellis[:, 0] = 0
            rows.append(new_row)
            cur = new_row
        # one aligned (8, 128) store instead of 8 masked single-sublane stores
        tr_ref[pl.ds(base, UNROLL), :] = jnp.concatenate(rows, axis=0)
        return cur

    prev_final = jax.lax.fori_loop(0, Tt // UNROLL, block_body, prev_ref[...])
    prev_ref[...] = prev_final


# ----------------------------- Pallas wrappers -----------------------------
def emission_pallas(frames, W_pad, b_pad, tile_t):
    B, T_pad, _ = frames.shape
    return pl.pallas_call(
        emission_kernel,
        out_shape=jax.ShapeDtypeStruct((B, T_pad, V_PAD), jnp.float32),
        grid=(B, T_pad // tile_t),
        in_specs=[
            pl.BlockSpec((None, tile_t, HOP), lambda bi, ti: (bi, ti, 0)),
            pl.BlockSpec((HOP, V_PAD), lambda bi, ti: (0, 0)),
            pl.BlockSpec((1, V_PAD), lambda bi, ti: (0, 0)),
        ],
        out_specs=pl.BlockSpec((None, tile_t, V_PAD), lambda bi, ti: (bi, ti, 0)),
        compiler_params=pltpu.CompilerParams(
            dimension_semantics=("parallel", "parallel")),
    )(frames, W_pad, b_pad)


def trellis_pallas(emission, onehot, tile_t):
    B, T_pad, _ = emission.shape
    return pl.pallas_call(
        trellis_kernel,
        out_shape=jax.ShapeDtypeStruct((B, T_pad, L_PAD), jnp.float32),
        grid=(B, T_pad // tile_t),
        in_specs=[
            pl.BlockSpec((None, tile_t, V_PAD), lambda bi, ti: (bi, ti, 0)),
            pl.BlockSpec((None, V_PAD, L_PAD), lambda bi, ti: (bi, 0, 0)),
        ],
        out_specs=pl.BlockSpec((None, tile_t, L_PAD), lambda bi, ti: (bi, ti, 0)),
        scratch_shapes=[
            pltpu.VMEM((tile_t, L_PAD), jnp.float32),   # comb
            pltpu.VMEM((tile_t, L_PAD), jnp.float32),   # blank broadcast
            pltpu.VMEM((1, L_PAD), jnp.float32),        # carried DP row
        ],
        compiler_params=pltpu.CompilerParams(
            dimension_semantics=("parallel", "arbitrary")),
    )(emission, onehot)


@partial(jax.jit, static_argnames=("tile_t",))
def _run_kernels(frames, W_pad, b_pad, onehot, *, tile_t):
    emission = emission_pallas(frames, W_pad, b_pad, tile_t)
    trellis_rows = trellis_pallas(emission, onehot, tile_t)
    return emission, trellis_rows


# ----------------------------- host-side glue ------------------------------
def decode_text(text: str) -> List[int]:
    text = text.replace(' ', '|').upper()
    return [CHAR2IDX.get(ch, UNK_IDX) for ch in text]


def backtrack(trellis: np.ndarray, emission: np.ndarray, tokens: List[int],
              blank_id: int = 0) -> List[Point]:
    j = trellis.shape[1] - 1
    t_start = int(np.argmax(trellis[:, j]))
    path = []
    for t in range(t_start, 0, -1):
        stayed = trellis[t - 1, j] + emission[t - 1, blank_id]
        changed = trellis[t - 1, j - 1] + emission[t - 1, tokens[j - 1]]
        prob = float(np.exp(emission[t - 1, tokens[j - 1] if changed > stayed else 0]))
        path.append(Point(j - 1, t - 1, prob))
        if changed > stayed:
            j -= 1
            if j == 0:
                break
    else:
        raise ValueError('failed to align')
    return path[::-1]


def merge_repeats(text: str, path: List[Point]) -> List[Segment]:
    # TODO(synk): original merge_repeats is a stub (`pass`); standard merging used.
    segments = []
    i1 = 0
    while i1 < len(path):
        i2 = i1
        while i2 < len(path) and path[i1].token_index == path[i2].token_index:
            i2 += 1
        score = sum(p.score for p in path[i1:i2]) / (i2 - i1)
        segments.append(Segment(text[path[i1].token_index],
                                path[i1].time_index,
                                path[i2 - 1].time_index + 1,
                                score))
        i1 = i2
    return segments


def ref_trellis_np(emission: np.ndarray, tokens: List[int], blank_id: int = 0) -> np.ndarray:
    T = emission.shape[0]
    L = len(tokens)
    tr = np.full((T + 1, L + 1), -np.inf, dtype=np.float32)
    tr[:, 0] = 0.0
    tok = np.asarray(tokens)
    for t in range(T):
        tr[t + 1, 1:] = np.maximum(tr[t, 1:] + emission[t, blank_id],
                                   tr[t, :-1] + emission[t, tok])
    return tr


def _prepare_inputs(wavs, wav_lengths, texts, W, b):
    if isinstance(texts, str):
        texts = [texts]
    B = wavs.shape[0]
    lengths = [int(x) for x in np.asarray(wav_lengths)]
    num_frames = [l // HOP for l in lengths]
    T_max = max(1, max(num_frames))
    tile_t = min(512, _round_up(T_max, 16))          # 16-row granule (bf16 sublane pack)
    T_pad = _round_up(T_max, tile_t)

    need = T_pad * HOP
    wav_len = wavs.shape[1]
    wavs_p = wavs if need <= wav_len else jnp.pad(wavs, ((0, 0), (0, need - wav_len)))
    frames = wavs_p[:, :need].reshape(B, T_pad, HOP).astype(jnp.bfloat16)

    # acoustic head padded to V_PAD lanes; padded vocab bias = -1e30 so the
    # in-kernel log-softmax normalizer ignores those columns.
    W_pad = jnp.zeros((HOP, V_PAD), jnp.float32).at[:, :VOCAB].set(W).astype(jnp.bfloat16)
    b_pad = jnp.full((1, V_PAD), NEG_LARGE, jnp.float32).at[0, :VOCAB].set(b)

    texts_proc = [t.replace(' ', '|').upper() for t in texts]
    tokens_list = [decode_text(t) for t in texts]
    onehot = np.zeros((B, V_PAD, L_PAD), np.float32)
    for i, toks in enumerate(tokens_list):
        assert len(toks) + 1 <= L_PAD, "text too long (L+1 must fit in 128 lanes)"
        onehot[i, BLANK_ID, 0] = 1.0                      # fused blank column
        for j, tok in enumerate(toks):
            onehot[i, tok, j + 1] = 1.0
    return (frames, W_pad, b_pad, jnp.asarray(onehot),
            tokens_list, texts_proc, num_frames, tile_t)


def grapheme_aligner_forward(wavs: jnp.ndarray,
                             wav_lengths: jnp.ndarray,
                             texts: Union[str, List[str]],
                             W: jnp.ndarray,
                             b: jnp.ndarray) -> jnp.ndarray:
    (frames, W_pad, b_pad, onehot, tokens_list, texts_proc,
     num_frames, tile_t) = _prepare_inputs(wavs, wav_lengths, texts, W, b)

    # ---- batched Pallas kernels: acoustic head + log_softmax, CTC trellis DP ----
    emission, trellis_rows = _run_kernels(frames, W_pad, b_pad, onehot, tile_t=tile_t)

    # single device->host transfer; the rest is sequential data-dependent control flow
    emission_np = np.asarray(emission)
    trellis_np = np.asarray(trellis_rows)

    batch_size = len(tokens_list)
    durations = []
    for i in range(batch_size):
        nf = num_frames[i]
        L = len(tokens_list[i])
        em_i = emission_np[i, :nf, :]
        row0 = np.full((1, L + 1), -np.inf, np.float32)
        row0[0, 0] = 0.0
        tr_i = np.concatenate([row0, trellis_np[i, :nf, :L + 1]], axis=0)

        path = backtrack(tr_i, em_i, tokens_list[i])
        segments = merge_repeats(texts_proc[i], path)
        relative_durations = np.array(
            [segment.length / nf for segment in segments], dtype=np.float32)
        durations.append(relative_durations)

    max_len = max(d.shape[0] for d in durations)
    out = np.zeros((batch_size, max_len), dtype=np.float32)   # pad_sequence(...).T
    for i, d in enumerate(durations):
        out[i, :d.shape[0]] = d
    return jnp.asarray(out)


# ----------------------------- test-only checks -----------------------------
def _reference_check(wavs, wav_lengths, texts, W, b):
    # Kept OUT of the forward pass (they force device->host syncs).
    (frames, W_pad, b_pad, onehot, tokens_list, _tp,
     num_frames, tile_t) = _prepare_inputs(wavs, wav_lengths, texts, W, b)
    em, tr = _run_kernels(frames, W_pad, b_pad, onehot, tile_t=tile_t)
    em_np, tr_np = np.asarray(em), np.asarray(tr)

    # emission vs pure-JAX reference (same bf16 inputs, f32 accumulation)
    ref_logits = jnp.dot(frames, W_pad, preferred_element_type=jnp.float32) + b_pad
    ref_em = np.asarray(jax.nn.log_softmax(ref_logits, axis=-1))
    assert np.allclose(em_np[..., :VOCAB], ref_em[..., :VOCAB], rtol=1e-3, atol=1e-3)

    # trellis DP vs numpy reference built from the kernel's emissions
    for i, toks in enumerate(tokens_list):
        nf, L = num_frames[i], len(toks)
        ref_tr = ref_trellis_np(em_np[i, :nf, :], toks)
        row0 = np.full((1, L + 1), -np.inf, np.float32)
        row0[0, 0] = 0.0
        got_tr = np.concatenate([row0, tr_np[i, :nf, :L + 1]], axis=0)
        assert np.allclose(got_tr, ref_tr, rtol=1e-4, atol=1e-4)


# ----------------------------------- main -----------------------------------
if __name__ == "__main__":
    key = jax.random.PRNGKey(0)
    k_wav, k_w, k_b = jax.random.split(key, 3)

    B = 2
    WAV_LEN = 2048
    wavs = jax.random.normal(k_wav, (B, WAV_LEN), dtype=jnp.float32)
    wav_lengths = jnp.array([2048, 1792], dtype=jnp.int32)
    texts = ["ab cd", "hey"]

    # deterministic synthetic acoustic-head parameters
    W = 0.05 * jax.random.normal(k_w, (HOP, VOCAB), dtype=jnp.float32)
    b = 0.01 * jax.random.normal(k_b, (VOCAB,), dtype=jnp.float32)

    _reference_check(wavs, wav_lengths, texts, W, b)   # correctness test (not in forward)

    durations = grapheme_aligner_forward(wavs, wav_lengths, texts, W, b)
    jax.block_until_ready(durations)
    print("KERNEL_OK")
</pallas_src>

<mosaic_0001>
module attributes {stable_mosaic.version = 11 : i64} {
  func.func @trellis_kernel(%arg0: i32, %arg1: i32, %arg2: memref<1x16x128xf32, #tpu.memory_space<vmem>>, %arg3: memref<1x128x128xf32, #tpu.memory_space<vmem>>, %arg4: memref<1x16x128xf32, #tpu.memory_space<vmem>>, %arg5: memref<16x128xf32, #tpu.memory_space<vmem>>, %arg6: memref<16x128xf32, #tpu.memory_space<vmem>>, %arg7: memref<1x128xf32, #tpu.memory_space<vmem>>) attributes {dimension_semantics = [#tpu.dimension_semantics<parallel>, #tpu.dimension_semantics<arbitrary>], iteration_bounds = array<i64: 2, 1>, scalar_prefetch = 0 : i64, scratch_operands = 3 : i64, tpu.core_type = #tpu.core_type<tc>, window_params = [{transform_indices = @transform_0, window_bounds = array<i64: 1, 16, 128>}, {transform_indices = @transform_1, window_bounds = array<i64: 1, 128, 128>}, {transform_indices = @transform_2, window_bounds = array<i64: 1, 16, 128>}]} {
    %0 = tpu.iota {dimensions = array<i32: 1>} : vector<1x128xi32>
    %cst = arith.constant 0.000000e+00 : f32
    %1 = vector.broadcast %cst : f32 to vector<1x128xf32>
    %c0 = arith.constant 0 : index
    %c0_0 = arith.constant 0 : index
    %c0_1 = arith.constant 0 : index
    %2 = vector.load %arg2[%c0, %c0_0, %c0_1] : memref<1x16x128xf32, #tpu.memory_space<vmem>>, vector<1x16x128xf32>
    %3 = vector.shape_cast %2 : vector<1x16x128xf32> to vector<16x128xf32>
    %c0_2 = arith.constant 0 : index
    %c0_3 = arith.constant 0 : index
    %c0_4 = arith.constant 0 : index
    %4 = vector.load %arg3[%c0_2, %c0_3, %c0_4] : memref<1x128x128xf32, #tpu.memory_space<vmem>>, vector<1x128x128xf32>
    %5 = vector.shape_cast %4 : vector<1x128x128xf32> to vector<128x128xf32>
    %cst_5 = arith.constant dense<0.000000e+00> : vector<16x128xf32>
    %6 = tpu.matmul %3, %5, %cst_5 {dimension_numbers = #tpu.dot_dimension_numbers<[1], [0], [0], [1], [0, 0, 1, 1], [], []>} : vector<16x128xf32>, vector<128x128xf32>, vector<16x128xf32> -> vector<16x128xf32>
    %c0_6 = arith.constant 0 : index
    %c0_7 = arith.constant 0 : index
    %7 = vector.load %arg5[%c0_6, %c0_7] : memref<16x128xf32, #tpu.memory_space<vmem>>, vector<16x128xf32>
    tpu.vector_store %arg5[%c0_6, %c0_7], %6 {strides = array<i32>} : memref<16x128xf32, #tpu.memory_space<vmem>>, vector<16x128xf32>,
    %8 = vector.extract_strided_slice %6 {offsets = [0, 0], sizes = [16, 1], strides = [1, 1]} : vector<16x128xf32> to vector<16x1xf32>
    %9 = vector.shape_cast %8 : vector<16x1xf32> to vector<16x1xf32>
    %10 = vector.broadcast %9 : vector<16x1xf32> to vector<16x128xf32>
    %c0_8 = arith.constant 0 : index
    %c0_9 = arith.constant 0 : index
    %11 = vector.load %arg6[%c0_8, %c0_9] : memref<16x128xf32, #tpu.memory_space<vmem>>, vector<16x128xf32>
    tpu.vector_store %arg6[%c0_8, %c0_9], %10 {strides = array<i32>} : memref<16x128xf32, #tpu.memory_space<vmem>>, vector<16x128xf32>,
    %c0_i32 = arith.constant 0 : i32
    %12 = arith.cmpi eq, %arg1, %c0_i32 : i32
    %13 = arith.extui %12 : i1 to i32
    %c0_i32_10 = arith.constant 0 : i32
    %14 = arith.cmpi ne, %13, %c0_i32_10 : i32
    scf.if %14 {
      %c0_i32_17 = arith.constant 0 : i32
      %19 = vector.broadcast %c0_i32_17 : i32 to vector<1x128xi32>
      %20 = arith.cmpi eq, %0, %19 : vector<1x128xi32>
      %cst_18 = arith.constant 0xFF800000 : f32
      %21 = vector.broadcast %cst_18 : f32 to vector<1x128xf32>
      %22 = arith.select %20, %1, %21 : vector<1x128xi1>, vector<1x128xf32>
      %c0_19 = arith.constant 0 : index
      %c0_20 = arith.constant 0 : index
      %23 = vector.load %arg7[%c0_19, %c0_20] : memref<1x128xf32, #tpu.memory_space<vmem>>, vector<1x128xf32>
      tpu.vector_store %arg7[%c0_19, %c0_20], %22 {strides = array<i32>} : memref<1x128xf32, #tpu.memory_space<vmem>>, vector<1x128xf32>,
    } else {
    }
    %c0_11 = arith.constant 0 : index
    %c0_12 = arith.constant 0 : index
    %15 = vector.load %arg7[%c0_11, %c0_12] : memref<1x128xf32, #tpu.memory_space<vmem>>, vector<1x128xf32>
    %c0_i32_13 = arith.constant 0 : i32
    %c2_i32 = arith.constant 2 : i32
    %16 = arith.addi %c0_i32_13, %c2_i32 : i32
    %c1_i32 = arith.constant 1 : i32
    %17 = scf.for %arg8 = %c0_i32_13 to %16 step %c1_i32 iter_args(%arg9 = %15) -> (vector<1x128xf32>)  : i32 {
      %c8_i32 = arith.constant 8 : i32
      %19 = arith.muli %arg8, %c8_i32 : i32
      %20 = tpu.assume_multiple %19, 8 : i32
      %c0_i32_17 = arith.constant 0 : i32
      %21 = arith.addi %20, %c0_i32_17 : i32
      %22 = arith.index_cast %21 : i32 to index
      %c0_18 = arith.constant 0 : index
      %23 = vector.load %arg6[%22, %c0_18] : memref<16x128xf32, #tpu.memory_space<vmem>>, vector<1x128xf32>
      %c0_i32_19 = arith.constant 0 : i32
      %24 = arith.addi %20, %c0_i32_19 : i32
      %25 = arith.index_cast %24 : i32 to index
      %c0_20 = arith.constant 0 : index
      %26 = vector.load %arg5[%25, %c0_20] : memref<16x128xf32, #tpu.memory_space<vmem>>, vector<1x128xf32>
      %c1_i32_21 = arith.constant 1 : i32
      %27 = tpu.dynamic_rotate %arg9 by %c1_i32_21 dim 1 : vector<1x128xf32>, i32 -> vector<1x128xf32>
      %28 = arith.addf %arg9, %23 : vector<1x128xf32>
      %29 = arith.addf %27, %26 : vector<1x128xf32>
      %30 = arith.maximumf %28, %29 : vector<1x128xf32>
      %c0_i32_22 = arith.constant 0 : i32
      %31 = vector.broadcast %c0_i32_22 : i32 to vector<1x128xi32>
      %32 = arith.cmpi eq, %0, %31 : vector<1x128xi32>
      %33 = arith.select %32, %1, %30 : vector<1x128xi1>, vector<1x128xf32>
      %c1_i32_23 = arith.constant 1 : i32
      %34 = arith.addi %20, %c1_i32_23 : i32
      %35 = arith.index_cast %34 : i32 to index
      %c0_24 = arith.constant 0 : index
      %36 = vector.load %arg6[%35, %c0_24] : memref<16x128xf32, #tpu.memory_space<vmem>>, vector<1x128xf32>
      %c1_i32_25 = arith.constant 1 : i32
      %37 = arith.addi %20, %c1_i32_25 : i32
      %38 = arith.index_cast %37 : i32 to index
      %c0_26 = arith.constant 0 : index
      %39 = vector.load %arg5[%38, %c0_26] : memref<16x128xf32, #tpu.memory_space<vmem>>, vector<1x128xf32>
      %c1_i32_27 = arith.constant 1 : i32
      %40 = tpu.dynamic_rotate %33 by %c1_i32_27 dim 1 : vector<1x128xf32>, i32 -> vector<1x128xf32>
      %41 = arith.addf %33, %36 : vector<1x128xf32>
      %42 = arith.addf %40, %39 : vector<1x128xf32>
      %43 = arith.maximumf %41, %42 : vector<1x128xf32>
      %c0_i32_28 = arith.constant 0 : i32
      %44 = vector.broadcast %c0_i32_28 : i32 to vector<1x128xi32>
      %45 = arith.cmpi eq, %0, %44 : vector<1x128xi32>
      %46 = arith.select %45, %1, %43 : vector<1x128xi1>, vector<1x128xf32>
      %c2_i32_29 = arith.constant 2 : i32
      %47 = arith.addi %20, %c2_i32_29 : i32
      %48 = arith.index_cast %47 : i32 to index
      %c0_30 = arith.constant 0 : index
      %49 = vector.load %arg6[%48, %c0_30] : memref<16x128xf32, #tpu.memory_space<vmem>>, vector<1x128xf32>
      %c2_i32_31 = arith.constant 2 : i32
      %50 = arith.addi %20, %c2_i32_31 : i32
      %51 = arith.index_cast %50 : i32 to index
      %c0_32 = arith.constant 0 : index
      %52 = vector.load %arg5[%51, %c0_32] : memref<16x128xf32, #tpu.memory_space<vmem>>, vector<1x128xf32>
      %c1_i32_33 = arith.constant 1 : i32
      %53 = tpu.dynamic_rotate %46 by %c1_i32_33 dim 1 : vector<1x128xf32>, i32 -> vector<1x128xf32>
      %54 = arith.addf %46, %49 : vector<1x128xf32>
      %55 = arith.addf %53, %52 : vector<1x128xf32>
      %56 = arith.maximumf %54, %55 : vector<1x128xf32>
      %c0_i32_34 = arith.constant 0 : i32
      %57 = vector.broadcast %c0_i32_34 : i32 to vector<1x128xi32>
      %58 = arith.cmpi eq, %0, %57 : vector<1x128xi32>
      %59 = arith.select %58, %1, %56 : vector<1x128xi1>, vector<1x128xf32>
      %c3_i32 = arith.constant 3 : i32
      %60 = arith.addi %20, %c3_i32 : i32
      %61 = arith.index_cast %60 : i32 to index
      %c0_35 = arith.constant 0 : index
      %62 = vector.load %arg6[%61, %c0_35] : memref<16x128xf32, #tpu.memory_space<vmem>>, vector<1x128xf32>
      %c3_i32_36 = arith.constant 3 : i32
      %63 = arith.addi %20, %c3_i32_36 : i32
      %64 = arith.index_cast %63 : i32 to index
      %c0_37 = arith.constant 0 : index
      %65 = vector.load %arg5[%64, %c0_37] : memref<16x128xf32, #tpu.memory_space<vmem>>, vector<1x128xf32>
      %c1_i32_38 = arith.constant 1 : i32
      %66 = tpu.dynamic_rotate %59 by %c1_i32_38 dim 1 : vector<1x128xf32>, i32 -> vector<1x128xf32>
      %67 = arith.addf %59, %62 : vector<1x128xf32>
      %68 = arith.addf %66, %65 : vector<1x128xf32>
      %69 = arith.maximumf %67, %68 : vector<1x128xf32>
      %c0_i32_39 = arith.constant 0 : i32
      %70 = vector.broadcast %c0_i32_39 : i32 to vector<1x128xi32>
      %71 = arith.cmpi eq, %0, %70 : vector<1x128xi32>
      %72 = arith.select %71, %1, %69 : vector<1x128xi1>, vector<1x128xf32>
      %c4_i32 = arith.constant 4 : i32
      %73 = arith.addi %20, %c4_i32 : i32
      %74 = arith.index_cast %73 : i32 to index
      %c0_40 = arith.constant 0 : index
      %75 = vector.load %arg6[%74, %c0_40] : memref<16x128xf32, #tpu.memory_space<vmem>>, vector<1x128xf32>
      %c4_i32_41 = arith.constant 4 : i32
      %76 = arith.addi %20, %c4_i32_41 : i32
      %77 = arith.index_cast %76 : i32 to index
      %c0_42 = arith.constant 0 : index
      %78 = vector.load %arg5[%77, %c0_42] : memref<16x128xf32, #tpu.memory_space<vmem>>, vector<1x128xf32>
      %c1_i32_43 = arith.constant 1 : i32
      %79 = tpu.dynamic_rotate %72 by %c1_i32_43 dim 1 : vector<1x128xf32>, i32 -> vector<1x128xf32>
      %80 = arith.addf %72, %75 : vector<1x128xf32>
      %81 = arith.addf %79, %78 : vector<1x128xf32>
      %82 = arith.maximumf %80, %81 : vector<1x128xf32>
      %c0_i32_44 = arith.constant 0 : i32
      %83 = vector.broadcast %c0_i32_44 : i32 to vector<1x128xi32>
      %84 = arith.cmpi eq, %0, %83 : vector<1x128xi32>
      %85 = arith.select %84, %1, %82 : vector<1x128xi1>, vector<1x128xf32>
      %c5_i32 = arith.constant 5 : i32
      %86 = arith.addi %20, %c5_i32 : i32
      %87 = arith.index_cast %86 : i32 to index
      %c0_45 = arith.constant 0 : index
      %88 = vector.load %arg6[%87, %c0_45] : memref<16x128xf32, #tpu.memory_space<vmem>>, vector<1x128xf32>
      %c5_i32_46 = arith.constant 5 : i32
      %89 = arith.addi %20, %c5_i32_46 : i32
      %90 = arith.index_cast %89 : i32 to index
      %c0_47 = arith.constant 0 : index
      %91 = vector.load %arg5[%90, %c0_47] : memref<16x128xf32, #tpu.memory_space<vmem>>, vector<1x128xf32>
      %c1_i32_48 = arith.constant 1 : i32
      %92 = tpu.dynamic_rotate %85 by %c1_i32_48 dim 1 : vector<1x128xf32>, i32 -> vector<1x128xf32>
      %93 = arith.addf %85, %88 : vector<1x128xf32>
      %94 = arith.addf %92, %91 : vector<1x128xf32>
      %95 = arith.maximumf %93, %94 : vector<1x128xf32>
      %c0_i32_49 = arith.constant 0 : i32
      %96 = vector.broadcast %c0_i32_49 : i32 to vector<1x128xi32>
      %97 = arith.cmpi eq, %0, %96 : vector<1x128xi32>
      %98 = arith.select %97, %1, %95 : vector<1x128xi1>, vector<1x128xf32>
      %c6_i32 = arith.constant 6 : i32
      %99 = arith.addi %20, %c6_i32 : i32
      %100 = arith.index_cast %99 : i32 to index
      %c0_50 = arith.constant 0 : index
      %101 = vector.load %arg6[%100, %c0_50] : memref<16x128xf32, #tpu.memory_space<vmem>>, vector<1x128xf32>
      %c6_i32_51 = arith.constant 6 : i32
      %102 = arith.addi %20, %c6_i32_51 : i32
      %103 = arith.index_cast %102 : i32 to index
      %c0_52 = arith.constant 0 : index
      %104 = vector.load %arg5[%103, %c0_52] : memref<16x128xf32, #tpu.memory_space<vmem>>, vector<1x128xf32>
      %c1_i32_53 = arith.constant 1 : i32
      %105 = tpu.dynamic_rotate %98 by %c1_i32_53 dim 1 : vector<1x128xf32>, i32 -> vector<1x128xf32>
      %106 = arith.addf %98, %101 : vector<1x128xf32>
      %107 = arith.addf %105, %104 : vector<1x128xf32>
      %108 = arith.maximumf %106, %107 : vector<1x128xf32>
      %c0_i32_54 = arith.constant 0 : i32
      %109 = vector.broadcast %c0_i32_54 : i32 to vector<1x128xi32>
      %110 = arith.cmpi eq, %0, %109 : vector<1x128xi32>
      %111 = arith.select %110, %1, %108 : vector<1x128xi1>, vector<1x128xf32>
      %c7_i32 = arith.constant 7 : i32
      %112 = arith.addi %20, %c7_i32 : i32
      %113 = arith.index_cast %112 : i32 to index
      %c0_55 = arith.constant 0 : index
      %114 = vector.load %arg6[%113, %c0_55] : memref<16x128xf32, #tpu.memory_space<vmem>>, vector<1x128xf32>
      %c7_i32_56 = arith.constant 7 : i32
      %115 = arith.addi %20, %c7_i32_56 : i32
      %116 = arith.index_cast %115 : i32 to index
      %c0_57 = arith.constant 0 : index
      %117 = vector.load %arg5[%116, %c0_57] : memref<16x128xf32, #tpu.memory_space<vmem>>, vector<1x128xf32>
      %c1_i32_58 = arith.constant 1 : i32
      %118 = tpu.dynamic_rotate %111 by %c1_i32_58 dim 1 : vector<1x128xf32>, i32 -> vector<1x128xf32>
      %119 = arith.addf %111, %114 : vector<1x128xf32>
      %120 = arith.addf %118, %117 : vector<1x128xf32>
      %121 = arith.maximumf %119, %120 : vector<1x128xf32>
      %c0_i32_59 = arith.constant 0 : i32
      %122 = vector.broadcast %c0_i32_59 : i32 to vector<1x128xi32>
      %123 = arith.cmpi eq, %0, %122 : vector<1x128xi32>
      %124 = arith.select %123, %1, %121 : vector<1x128xi1>, vector<1x128xf32>
      %125 = tpu.concatenate %33, %46, %59, %72, %85, %98, %111, %124 in 0 : vector<1x128xf32>, vector<1x128xf32>, vector<1x128xf32>, vector<1x128xf32>, vector<1x128xf32>, vector<1x128xf32>, vector<1x128xf32>, vector<1x128xf32> -> vector<8x128xf32>
      %c0_60 = arith.constant 0 : index
      %126 = arith.index_cast %20 : i32 to index
      %c0_61 = arith.constant 0 : index
      %127 = vector.load %arg4[%c0_60, %126, %c0_61] : memref<1x16x128xf32, #tpu.memory_space<vmem>>, vector<1x8x128xf32>
      %128 = vector.shape_cast %127 : vector<1x8x128xf32> to vector<8x128xf32>
      %129 = vector.shape_cast %125 : vector<8x128xf32> to vector<1x8x128xf32>
      tpu.vector_store %arg4[%c0_60, %126, %c0_61], %129 {strides = array<i32>} : memref<1x16x128xf32, #tpu.memory_space<vmem>>, vector<1x8x128xf32>,
      scf.yield %124 : vector<1x128xf32>
    }
    %c2_i32_14 = arith.constant 2 : i32
    %c0_15 = arith.constant 0 : index
    %c0_16 = arith.constant 0 : index
    %18 = vector.load %arg7[%c0_15, %c0_16] : memref<1x128xf32, #tpu.memory_space<vmem>>, vector<1x128xf32>
    tpu.vector_store %arg7[%c0_15, %c0_16], %17 {strides = array<i32>} : memref<1x128xf32, #tpu.memory_space<vmem>>, vector<1x128xf32>,
    return
  }
  func.func @transform_0(%arg0: i32, %arg1: i32) -> (i32, i32, i32) {
    %c0_i32 = arith.constant 0 : i32
    %c0_i32_0 = arith.constant 0 : i32
    return %arg0, %arg1, %c0_i32 : i32, i32, i32
  }
  func.func @transform_1(%arg0: i32, %arg1: i32) -> (i32, i32, i32) {
    %c0_i32 = arith.constant 0 : i32
    %c0_i32_0 = arith.constant 0 : i32
    %c0_i32_1 = arith.constant 0 : i32
    return %arg0, %c0_i32, %c0_i32_0 : i32, i32, i32
  }
  func.func @transform_2(%arg0: i32, %arg1: i32) -> (i32, i32, i32) {
    %c0_i32 = arith.constant 0 : i32
    %c0_i32_0 = arith.constant 0 : i32
    return %arg0, %arg1, %c0_i32 : i32, i32, i32
  }
}

module attributes {stable_mosaic.version = 11 : i64} {
  func.func @emission_kernel(%arg0: i32, %arg1: i32, %arg2: memref<1x16x128xbf16, #tpu.memory_space<vmem>>, %arg3: memref<128x128xbf16, #tpu.memory_space<vmem>>, %arg4: memref<1x128xf32, #tpu.memory_space<vmem>>, %arg5: memref<1x16x128xf32, #tpu.memory_space<vmem>>) attributes {dimension_semantics = [#tpu.dimension_semantics<parallel>, #tpu.dimension_semantics<parallel>], iteration_bounds = array<i64: 2, 1>, scalar_prefetch = 0 : i64, scratch_operands = 0 : i64, tpu.core_type = #tpu.core_type<tc>, window_params = [{transform_indices = @transform_0, window_bounds = array<i64: 1, 16, 128>}, {pipeline_mode = #tpu.pipeline_mode<synchronous>, transform_indices = @transform_1, window_bounds = array<i64: 128, 128>}, {pipeline_mode = #tpu.pipeline_mode<synchronous>, transform_indices = @transform_2, window_bounds = array<i64: 1, 128>}, {transform_indices = @transform_3, window_bounds = array<i64: 1, 16, 128>}]} {
    %c0 = arith.constant 0 : index
    %c0_0 = arith.constant 0 : index
    %c0_1 = arith.constant 0 : index
    %0 = vector.load %arg2[%c0, %c0_0, %c0_1] : memref<1x16x128xbf16, #tpu.memory_space<vmem>>, vector<1x16x128xbf16>
    %1 = vector.shape_cast %0 : vector<1x16x128xbf16> to vector<16x128xbf16>
    %c0_2 = arith.constant 0 : index
    %c0_3 = arith.constant 0 : index
    %2 = vector.load %arg3[%c0_2, %c0_3] : memref<128x128xbf16, #tpu.memory_space<vmem>>, vector<128x128xbf16>
    %cst = arith.constant dense<0.000000e+00> : vector<16x128xf32>
    %3 = tpu.matmul %1, %2, %cst {dimension_numbers = #tpu.dot_dimension_numbers<[1], [0], [0], [1], [0, 0, 1, 1], [], []>} : vector<16x128xbf16>, vector<128x128xbf16>, vector<16x128xf32> -> vector<16x128xf32>
    %c0_4 = arith.constant 0 : index
    %c0_5 = arith.constant 0 : index
    %4 = vector.load %arg4[%c0_4, %c0_5] : memref<1x128xf32, #tpu.memory_space<vmem>>, vector<1x128xf32>
    %5 = vector.broadcast %4 : vector<1x128xf32> to vector<16x128xf32>
    %6 = arith.addf %3, %5 : vector<16x128xf32>
    %cst_6 = arith.constant dense<0xFF800000> : vector<16xf32>
    %7 = vector.multi_reduction <maximumf>, %6, %cst_6 [1] : vector<16x128xf32> to vector<16xf32>
    %8 = vector.shape_cast %7 : vector<16xf32> to vector<16x1xf32>
    %9 = vector.broadcast %8 : vector<16x1xf32> to vector<16x128xf32>
    %10 = arith.subf %6, %9 : vector<16x128xf32>
    %11 = math.exp %10 : vector<16x128xf32>
    %cst_7 = arith.constant dense<0.000000e+00> : vector<16xf32>
    %12 = vector.multi_reduction <add>, %11, %cst_7 [1] : vector<16x128xf32> to vector<16xf32>
    %13 = vector.shape_cast %12 : vector<16xf32> to vector<16x1xf32>
    %14 = math.log %13 : vector<16x1xf32>
    %15 = vector.broadcast %14 : vector<16x1xf32> to vector<16x128xf32>
    %16 = arith.subf %10, %15 : vector<16x128xf32>
    %c0_8 = arith.constant 0 : index
    %c0_9 = arith.constant 0 : index
    %c0_10 = arith.constant 0 : index
    %17 = vector.load %arg5[%c0_8, %c0_9, %c0_10] : memref<1x16x128xf32, #tpu.memory_space<vmem>>, vector<1x16x128xf32>
    %18 = vector.shape_cast %17 : vector<1x16x128xf32> to vector<16x128xf32>
    %19 = vector.shape_cast %16 : vector<16x128xf32> to vector<1x16x128xf32>
    tpu.vector_store %arg5[%c0_8, %c0_9, %c0_10], %19 {strides = array<i32>} : memref<1x16x128xf32, #tpu.memory_space<vmem>>, vector<1x16x128xf32>,
    return
  }
  func.func @transform_0(%arg0: i32, %arg1: i32) -> (i32, i32, i32) {
    %c0_i32 = arith.constant 0 : i32
    %c0_i32_0 = arith.constant 0 : i32
    return %arg0, %arg1, %c0_i32 : i32, i32, i32
  }
  func.func @transform_1(%arg0: i32, %arg1: i32) -> (i32, i32) {
    %c0_i32 = arith.constant 0 : i32
    %c0_i32_0 = arith.constant 0 : i32
    %c0_i32_1 = arith.constant 0 : i32
    return %c0_i32, %c0_i32_0 : i32, i32
  }
  func.func @transform_2(%arg0: i32, %arg1: i32) -> (i32, i32) {
    %c0_i32 = arith.constant 0 : i32
    %c0_i32_0 = arith.constant 0 : i32
    %c0_i32_1 = arith.constant 0 : i32
    return %c0_i32, %c0_i32_0 : i32, i32
  }
  func.func @transform_3(%arg0: i32, %arg1: i32) -> (i32, i32, i32) {
    %c0_i32 = arith.constant 0 : i32
    %c0_i32_0 = arith.constant 0 : i32
    return %arg0, %arg1, %c0_i32 : i32, i32, i32
  }
}

</mosaic_0001>

<bundles_post_ra>
// kernel: _run_kernels.3
= control target key start
LH: loop header
LB: loop body
LE: loop exit
PB: predicated region body
PF: predicated region fallthrough
CT: control target
= control target key end

     0   :  { %7 = vsyncpa [#allocation6], 0  ;;  %s1224_s0 = inlined_call_operand.vmem [shape: f32[2,16,128], index: 0, kind: input, shape index: {}]   ;;  %s1225_s1 = inlined_call_operand.hbm [shape: f32[2,128,128], index: 1, kind: input, shape index: {}]   ;;  %s1226_s2 = inlined_call_operand.hbm [shape: f32[2,16,128], index: 2, kind: output, shape index: {}]  }
   0x1   :  { %9 = vsyncpa [#allocation6 + $0x1], 0 }
   0x2   :  { %10 = vsyncpa [#allocation7], 0 }
   0x3   :  { %12 = vsyncpa [#allocation7 + $0x1], 0  ;;  %s976_s9 = smov 0   ;;  %s978_s10 = smov 0  }
   0x4   :  { %s980_s11 = smov 0   ;;  %s982_s12 = smov 0  }
   0x5   :  { %s984_s13 = smov 0   ;;  %s986_s14 = smov 0  }
   0x6 LB: > { %s638_s15 = sadd.s32 4294967295, %s942_s14   ;;  %s639_s16 = sadd.s32 4294967294, %s942_s14   ;;  %s942_s14 = sphi %s986_s14, %s18_s14   ;;  %s938_s13 = sphi %s984_s13, %s1238_s13   ;;  %s934_s12 = sphi %s982_s12, %s1237_s12   ;;  %s930_s11 = sphi %s980_s11, %s1236_s11   ;;  %s926_s10 = sphi %s978_s10, %s1235_s10   ;;  %s922_s9 = sphi %s976_s9, %s1234_s9  }
   0x7   : > { %s30_s17 = sadd.s32 1, %s938_s13  ;;  %s65_s18 = sadd.s32 1, %s930_s11 }
   0x8   : > { %p32_p0 = scmp.ge.s32.totalorder %s30_s17, 2  ;;  %p72_p1 = scmp.ne.s32.totalorder %s930_s11, %s926_s10 }
   0x9   : > { %p73_p2 = scmp.eq.s32.totalorder %s942_s14, 0  ;;  %p78_p3 = scmp.ne.s32.totalorder %s926_s10, %s922_s9 }
   0xa   : > { %s1240_s17 = smov (%p32_p0, %s30_s17), 0  ;;  %p79_p5 = scmp.eq.s32.totalorder %s638_s15, 0 }
   0xb   : > { %p1017_p4 = por %p73_p2, %p72_p1  ;;  %s62_s20 = ssub.s32 %s938_s13, %s1240_s17 }
   0xc   : > { %p104_p6 = scmp.eq.s32.totalorder %s638_s15, 1  ;;  %p63_p7 = scmp.eq.s32.totalorder %s62_s20, 0 }
   0xd   : > { %p1023_p8 = por %p79_p5, %p78_p3  ;;  %p110_p10 = scmp.eq.s32.totalorder %s639_s16, 1 }
   0xe   : > { %p1027_p9 = por %p104_p6, %p72_p1  ;;  %p752_p13 = scmp.lt.s32.totalorder %s942_s14, 2 }
   0xf   : > { %s1032_s23 = scalar_select %p63_p7, %s930_s11, %s65_s18  }
  0x10   : > { %p1034_p11 = por %p110_p10, %p78_p3  ;;  %s143_s25 = sand.u32 1, %s930_s11  }
  0x11   : > { %s642_s26 = sshll.u32 %s143_s25, 7  ;;  %s684_s27 = sshll.u32 %s938_s13, 11 }
  0x12   : > { %s153_s30 = scalar_lea.hbm %s1225_s1, %s684_s27  ;;  %s147_s3 = scalar_lea.vmem [#allocation5], %s642_s26 }
  0x13   : > { %s154_s4 = sshll.u32 %s147_s3, 4  ;;  %p1047_p0 = pnand %p752_p13, %p1017_p4  ;;  %s155_s4 = int_to_ptr.vmem [resolvable:$true] %s154_s4 }
  0x14   : > { %p645_p1 = scmp.ge.s32.totalorder %s942_s14, 1  ;;  %s144_s6 = scalar_lea.sflag [#allocation6], %s143_s25 }
  0x15   : > { %p828_p2 = pneg %p1047_p0  ;;  %s839_s7 = scalar_lea.vmem %s155_s4, 2048 }
  0x16   : > { %p840_p3 = scmp.ne.s32.totalorder %s155_s4, %s839_s7  ;;  %s952_s8 = smov [#allocation5]  }
  0x17   : > { %s844_s15 = sshll.u32 %s952_s8, 4  ;;  %s845_s15 = int_to_ptr.vmem [resolvable:$false] %s844_s15 }
  0x18   : > { %p842_p5 = pnand %p840_p3, %p828_p2  ;;  %s846_s16 = scalar_lea.vmem %s845_s15, 4096 }
  0x19   : > { %p847_p7 = scmp.lt.s32.totalorder %s155_s4, %s845_s15  ;;  %p848_p10 = scmp.lt.s32.totalorder %s846_s16, %s839_s7 }
  0x1a   : > { %p843_p6 = pneg %p842_p5 }
  0x1b   : > { %p849_p12 = por %p848_p10, %p847_p7 }
  0x1d   : > { %p850_p4 = pnand %p849_p12, %p843_p6 }
  0x1f   : > { %853 = shalt.err (!%p850_p4)
}
  0x20   : > { %s953_s18 = smov 128   ;;  %s954_s19 = smov 8  }
  0x21   : > { %747 = dma.hbm_to_vmem [thread:$0]  (!%p1047_p0), %s153_s30, 2048, %s155_s4, %s144_s6, %s953_s18, %s953_s18, %s954_s19  }
  0x22   : > { %p162_p13 = scmp.lt.s32.totalorder %s942_s14, 3 }
  0x24   : > { %p163_p2 = pnand %p645_p1, %p162_p13 }
  0x25   : > { %s1060_s20 = sand.u32 (!%p163_p2), 1, %s926_s10  }
  0x26   : > { %166 = sbr.rel (%p163_p2) target bundleno = 1379 (0x563), region = 28  ;;  %s646_s25 = sshll.u32 (!%p163_p2), %s1060_s20, 7 }
  0x27   : > { %s169_s26 = scalar_lea.sflag (!%p163_p2), [#allocation6], %s1060_s20  ;;  %s1064_s27 = scalar_lea.vmem (!%p163_p2), [#allocation5], %s646_s25 }
  0x2b   : > { %913 = dma.done.wait (%p1023_p8), %s169_s26, 2048  }
  0x2c   : > { %915 = vsyncadd (%p1023_p8), %s169_s26, 4294965248  ;;  %v213_v0 = vlaneseq  ;;  %s647_s28 = sshll.u32 %s1060_s20, 4  ;;  %p203_p12 = scmp.lt.s32.totalorder %s934_s12, 1  ;;  %v955_v2 = vmov -inf   ;;  %v232_v4 = vld [vmem:[%s1064_s27 + $0x78] sm:$0xff]  ;;  %v231_v5 = vld [vmem:[%s1064_s27 + $0x70] sm:$0xff] }
  0x2d   : > { %705 = vmatprep.subr.mxu0 %v232_v4  ;;  %v230_v6 = vld [vmem:[%s1064_s27 + $0x68] sm:$0xff]  ;;  %v229_v7 = vld [vmem:[%s1064_s27 + $0x60] sm:$0xff]  ;;  %v228_v10 = vld [vmem:[%s1064_s27 + $0x58] sm:$0xff]  ;;  %v956_v23 = vmov 0   ;;  %s1103_s5 = scalar_lea.vmem [#allocation8], %s647_s28  ;;  %s1107_s6 = smov 0  }
  0x2e   : > { %v1072_v1 = vand.u32 127, %v213_v0  ;;  %s204_s29 = scalar_select %p203_p12, %s934_s12, 1  ;;  %706 = vmatpush3.msra.mxu0 %v232_v4  ;;  %v227_v11 = vld [vmem:[%s1064_s27 + $0x50] sm:$0xff]  ;;  %v226_v12 = vld [vmem:[%s1064_s27 + $0x48] sm:$0xff]  ;;  %v225_v13 = vld [vmem:[%s1064_s27 + $0x40] sm:$0xff]  ;;  %825 = vset.pattern.permute.xlu0 %v956_v23 }
  0x2f   : > { %707 = vmatprep.subr.mxu0 %v231_v5  ;;  %v224_v14 = vld [vmem:[%s1064_s27 + $0x38] sm:$0xff]  ;;  %v223_v15 = vld [vmem:[%s1064_s27 + $0x30] sm:$0xff]  ;;  %v222_v16 = vld [vmem:[%s1064_s27 + $0x28] sm:$0xff] }
  0x30   : > { %vm326_vm0 = vcmp.eq.s32.totalorder %v1072_v1, 0  ;;  %s685_s21 = sshll.u32 %s204_s29, 4  ;;  %708 = vmatpush3.msra.mxu0 %v231_v5  ;;  %v221_v17 = vld [vmem:[%s1064_s27 + $0x20] sm:$0xff]  ;;  %v220_v18 = vld [vmem:[%s1064_s27 + $0x18] sm:$0xff]  ;;  %v219_v19 = vld [vmem:[%s1064_s27 + $0x10] sm:$0xff] }
  0x31   : > { %v327_v3 = vsel %vm326_vm0, 0.0, %v955_v2  ;;  %s1084_s4 = scalar_lea.vmem %s1224_s0, %s685_s21  ;;  %709 = vmatprep.subr.mxu0 %v230_v6  ;;  %v218_v20 = vld [vmem:[%s1064_s27 + $0x8] sm:$0xff]  ;;  %v217_v21 = vld [vmem:[%s1064_s27] sm:$0xff] }
  0x32   : > { %328 = vst [vmem:[#allocation4] sm:$0x1] %v327_v3  ;;  %v215_v8 = vld [vmem:[%s1084_s4] sm:$0xff]  ;;  %710 = vmatpush3.msra.mxu0 %v230_v6  ;;  %v216_v22 = vld [vmem:[%s1084_s4 + $0x8] sm:$0xff] }
  0x33   : > { %737 = vmatprep.mubr.f32.mxu0 %v215_v8  ;;  %711 = vmatprep.subr.mxu0 %v229_v7 }
  0x34   : > { %712 = vmatpush3.msra.mxu0 %v229_v7 }
  0x35   : > { %713 = vmatprep.subr.mxu0 %v228_v10 }
  0x36   : > { %714 = vmatpush3.msra.mxu0 %v228_v10 }
  0x37   : > { %715 = vmatprep.subr.mxu0 %v227_v11 }
  0x38   : > { %716 = vmatpush3.msra.mxu0 %v227_v11 }
  0x39   : > { %v329_v9 = vld [vmem:[#allocation4] sm:$0x1]   ;;  %717 = vmatprep.subr.mxu0 %v226_v12 }
  0x3a   : > { %718 = vmatpush3.msra.mxu0 %v226_v12 }
  0x3b   : > { %719 = vmatprep.subr.mxu0 %v225_v13 }
  0x3c   : > { %720 = vmatpush3.msra.mxu0 %v225_v13 }
  0x3d   : > { %721 = vmatprep.subr.mxu0 %v224_v14 }
  0x3e   : > { %722 = vmatpush3.msra.mxu0 %v224_v14 }
  0x3f   : > { %723 = vmatprep.subr.mxu0 %v223_v15 }
  0x40   : > { %724 = vmatpush3.msra.mxu0 %v223_v15 }
  0x41   : > { %725 = vmatprep.subr.mxu0 %v222_v16 }
  0x42   : > { %726 = vmatpush3.msra.mxu0 %v222_v16 }
  0x43   : > { %727 = vmatprep.subr.mxu0 %v221_v17 }
  0x44   : > { %728 = vmatpush3.msra.mxu0 %v221_v17 }
  0x45   : > { %729 = vmatprep.subr.mxu0 %v220_v18 }
  0x46   : > { %730 = vmatpush3.msra.mxu0 %v220_v18 }
  0x47   : > { %731 = vmatprep.subr.mxu0 %v219_v19 }
  0x48   : > { %732 = vmatpush3.msra.mxu0 %v219_v19 }
  0x49   : > { %733 = vmatprep.subr.mxu0 %v218_v20 }
  0x4a   : > { %734 = vmatpush3.msra.mxu0 %v218_v20 }
  0x4b   : > { %735 = vmatprep.subr.mxu0 %v217_v21 }
  0x4c   : > { %736 = vmatpush3.msra.mxu0 %v217_v21 }
  0x4d   : > { %738 = vmatmul.mubr.f32.vlgmr.msra.gmra.mxu0 %v216_v22 }
 0x10d   : > { %v739_v24 = vpop.f32.mrf.mxu0 }
 0x10e   : > { %309 = vst [vmem:[#allocation2 + $0x8] sm:$0xff] %v739_v24 }
 0x10f   : > { %v299_v25 = vpop.f32.mrf.mxu0 }
 0x110   : > { %308 = vst [vmem:[#allocation2] sm:$0xff] %v299_v25  ;;  %312 = vperm.xlu0 %825, %v299_v25  }
 0x114   : > { %317 = vperm.xlu0 %825, %v739_v24  }
 0x18b   : > { %v313_v26 = vpop.permute.xlu0 %312 }
 0x18c   : > { %320 = vst [vmem:[#allocation3] sm:$0xff] %v313_v26 }
 0x18f   : > { %v318_v27 = vpop.permute.xlu0 %317 }
 0x190   : > { %321 = vst [vmem:[#allocation3 + $0x8] sm:$0xff] %v318_v27 }
 0x191 LB: >> { %s957_s7 = smov 1   ;;  %s1115_s8 = sshll.u32 %s950_s6, 3  ;;  %vm447_vm1 = vcmask 1040384   ;;  %vm449_vm2 = vcmask 1041408   ;;  %vm451_vm3 = vcmask 1042432   ;;  %vm453_vm4 = vcmask 1043456   ;;  %s950_s6 = sphi %s1107_s6, %s335_s6   ;;  %v946_v9 = vphi %v329_v9, %v1232_v9  }
 0x192   : >> { %342 = vrot.lane.b32.xlu0 %v946_v9, %s957_s7  ;;  %s1118_s15 = scalar_lea.vmem [#allocation3], %s1115_s8  ;;  %s1122_s16 = scalar_lea.vmem [#allocation2], %s1115_s8  ;;  %vm455_vm5 = vcmask 1044480   ;;  %vm457_vm6 = vcmask 1045504   ;;  %vm459_vm7 = vcmask 1046528  }
 0x193   : >> { %v341_v29 = vld [vmem:[%s1122_s16] sm:$0x1]  ;;  %v654_v36 = vld [vmem:[%s1122_s16 + $0x1] sm:$0x1]  ;;  %v658_v43 = vld [vmem:[%s1122_s16 + $0x2] sm:$0x1]  ;;  %s461_s18 = scalar_lea.vmem %s1103_s5, %s1115_s8 [#allocation8] }
 0x194   : >> { %v662_v54 = vld [vmem:[%s1122_s16 + $0x3] sm:$0x1]  ;;  %v666_v63 = vld [vmem:[%s1122_s16 + $0x4] sm:$0x1]  ;;  %v674_v18 = vld [vmem:[%s1122_s16 + $0x6] sm:$0x1] }
 0x195   : >> { %v678_v27 = vld [vmem:[%s1122_s16 + $0x7] sm:$0x1]  ;;  %s335_s6 = sadd.s32 1, %s950_s6  }
 0x196   : >> { %p332_p8 = scmp.ge.s32.totalorder %s335_s6, 2  }
 0x197   : >> { %v339_v28 = vld [vmem:[%s1118_s15] sm:$0x1]  ;;  %v652_v35 = vld [vmem:[%s1118_s15 + $0x1] sm:$0x1]  ;;  %v656_v42 = vld [vmem:[%s1118_s15 + $0x2] sm:$0x1] }
 0x198   : >> { %v344_v30 = vadd.f32 %v946_v9, %v339_v28  ;;  %v660_v53 = vld [vmem:[%s1118_s15 + $0x3] sm:$0x1]  ;;  %v664_v62 = vld [vmem:[%s1118_s15 + $0x4] sm:$0x1]  ;;  %v668_v8 = vld [vmem:[%s1118_s15 + $0x5] sm:$0x1] }
 0x199   : >> { %v670_v9 = vld [vmem:[%s1122_s16 + $0x5] sm:$0x1]  ;;  %v672_v17 = vld [vmem:[%s1118_s15 + $0x6] sm:$0x1]  ;;  %v676_v26 = vld [vmem:[%s1118_s15 + $0x7] sm:$0x1] }
 0x19a   : > { %s686_s19 = sshll.u32 (%p332_p8), %s934_s12, 8  ;;  %s480_s28 = sshll.u32 (%p332_p8), %s1103_s5, 4  ;;  %s1176_s28 = int_to_ptr.vmem [resolvable:$true] %s480_s28 }
 0x19b   : > { %s1173_s27 = scalar_lea.hbm (%p332_p8), %s1226_s2, %s686_s19  ;;  %s465_s29 = scalar_lea.sflag (%p332_p8), [#allocation7], %s1060_s20 }
 0x19c   : > { %s854_s21 = scalar_lea.vmem (%p332_p8), %s1176_s28, 256  ;;  %s958_s30 = smov (%p332_p8), [#allocation8]  }
 0x19d   : > { %p855_p0 = scmp.ne.s32.totalorder (%p332_p8), %s1176_s28, %s854_s21  ;;  %s858_s3 = sshll.u32 (%p332_p8), %s958_s30, 4  ;;  %s859_s3 = int_to_ptr.vmem [resolvable:$false] %s858_s3 }
 0x19e   : > { %s860_s12 = scalar_lea.vmem (%p332_p8), %s859_s3, 512  ;;  %p861_p5 = scmp.lt.s32.totalorder (%p332_p8), %s1176_s28, %s859_s3 }
 0x19f   : > { %p856_p1 = pnand (%p332_p8), %p855_p0, %p1027_p9  ;;  %p862_p6 = scmp.lt.s32.totalorder (%p332_p8), %s860_s12, %s854_s21 }
 0x1a1   : > { %p857_p3 = pneg (%p332_p8), %p856_p1  ;;  %p863_p7 = por (%p332_p8), %p862_p6, %p861_p5 }
 0x1a3   : > { %p864_p10 = pnand (%p332_p8), %p863_p7, %p857_p3 }
 0x204   : >> { %v343_v31 = vpop.permute.xlu0 %342 }
 0x205   : >> { %v345_v32 = vadd.f32 %v343_v31, %v341_v29 }
 0x207   : >> { %v346_v33 = vmax.f32 %v344_v30, %v345_v32 }
 0x209   : >> { %v348_v34 = vsel %vm326_vm0, 0.0, %v346_v33 }
 0x20a   : >> { %354 = vrot.lane.b32.xlu0 %v348_v34, %s957_s7  ;;  %v356_v38 = vadd.f32 %v652_v35, %v348_v34 }
 0x27c   : >> { %v355_v37 = vpop.permute.xlu0 %354 }
 0x27d   : >> { %v357_v39 = vadd.f32 %v654_v36, %v355_v37 }
 0x27f   : >> { %v358_v40 = vmax.f32 %v356_v38, %v357_v39 }
 0x281   : >> { %v359_v41 = vsel %vm326_vm0, 0.0, %v358_v40 }
 0x282   : >> { %365 = vrot.lane.b32.xlu1 %v359_v41, %s957_s7  ;;  %v367_v45 = vadd.f32 %v656_v42, %v359_v41  ;;  %v427_v47 = vrot.slane %v359_v41, 7 }
 0x284   : >> { %v448_v51 = vsel %vm447_vm1, %v348_v34, %v427_v47 }
 0x2f4   : >> { %v366_v44 = vpop.permute.xlu1 %365 }
 0x2f5   : >> { %v368_v46 = vadd.f32 %v658_v43, %v366_v44 }
 0x2f7   : >> { %v369_v48 = vmax.f32 %v367_v45, %v368_v46 }
 0x2f9   : >> { %v370_v49 = vsel %vm326_vm0, 0.0, %v369_v48 }
 0x2fa   : >> { %376 = vrot.lane.b32.xlu1 %v370_v49, %s957_s7  ;;  %v430_v50 = vrot.slane %v370_v49, 6  ;;  %v378_v56 = vadd.f32 %v660_v53, %v370_v49 }
 0x2fc   : >> { %v450_v52 = vsel %vm449_vm2, %v448_v51, %v430_v50 }
 0x36c   : >> { %v377_v55 = vpop.permute.xlu1 %376 }
 0x36d   : >> { %v379_v57 = vadd.f32 %v662_v54, %v377_v55 }
 0x36f   : >> { %v380_v58 = vmax.f32 %v378_v56, %v379_v57 }
 0x371   : >> { %v381_v59 = vsel %vm326_vm0, 0.0, %v380_v58 }
 0x372   : >> { %387 = vrot.lane.b32.xlu0 %v381_v59, %s957_s7  ;;  %v433_v60 = vrot.slane %v381_v59, 5  ;;  %v389_v2 = vadd.f32 %v664_v62, %v381_v59 }
 0x374   : >> { %v452_v61 = vsel %vm451_vm3, %v450_v52, %v433_v60 }
 0x3e4   : >> { %v388_v0 = vpop.permute.xlu0 %387 }
 0x3e5   : >> { %v390_v3 = vadd.f32 %v666_v63, %v388_v0 }
 0x3e7   : >> { %v391_v4 = vmax.f32 %v389_v2, %v390_v3 }
 0x3e9   : >> { %v392_v5 = vsel %vm326_vm0, 0.0, %v391_v4 }
 0x3ea   : >> { %398 = vrot.lane.b32.xlu1 %v392_v5, %s957_s7  ;;  %v436_v6 = vrot.slane %v392_v5, 4  ;;  %v400_v11 = vadd.f32 %v668_v8, %v392_v5 }
 0x3ec   : >> { %v454_v7 = vsel %vm453_vm4, %v452_v61, %v436_v6 }
 0x45c   : >> { %v399_v10 = vpop.permute.xlu1 %398 }
 0x45d   : >> { %v401_v12 = vadd.f32 %v670_v9, %v399_v10 }
 0x45f   : >> { %v402_v13 = vmax.f32 %v400_v11, %v401_v12 }
 0x461   : >> { %v403_v14 = vsel %vm326_vm0, 0.0, %v402_v13 }
 0x462   : >> { %409 = vrot.lane.b32.xlu0 %v403_v14, %s957_s7  ;;  %v439_v15 = vrot.slane %v403_v14, 3  ;;  %v411_v20 = vadd.f32 %v672_v17, %v403_v14 }
 0x464   : >> { %v456_v16 = vsel %vm455_vm5, %v454_v7, %v439_v15 }
 0x4d4   : >> { %v410_v19 = vpop.permute.xlu0 %409 }
 0x4d5   : >> { %v412_v21 = vadd.f32 %v674_v18, %v410_v19 }
 0x4d7   : >> { %v413_v22 = vmax.f32 %v411_v20, %v412_v21 }
 0x4d9   : >> { %v414_v23 = vsel %vm326_vm0, 0.0, %v413_v22 }
 0x4da   : >> { %420 = vrot.lane.b32.xlu1 %v414_v23, %s957_s7  ;;  %v442_v24 = vrot.slane %v414_v23, 2  ;;  %v422_v29 = vadd.f32 %v676_v26, %v414_v23 }
 0x4dc   : >> { %v458_v25 = vsel %vm457_vm6, %v456_v16, %v442_v24 }
 0x54c   : >> { %v421_v28 = vpop.permute.xlu1 %420 }
 0x54d   : >> { %v423_v30 = vadd.f32 %v678_v27, %v421_v28 }
 0x54f   : >> { %v424_v31 = vmax.f32 %v422_v29, %v423_v30 }
 0x551   : >> { %v425_v32 = vsel %vm326_vm0, 0.0, %v424_v31   ;;  %334 = sbr.rel (!%p332_p8) target bundleno = 401 (0x191), region = 104 }
 0x552   : >> { %v445_v33 = vrot.slane %v425_v32, 1  ;;  %v1232_v9 = vmov %v425_v32  ;;  %463 = vst [vmem:[#allocation4] sm:$0x1] (%p332_p8), %v425_v32 }
 0x554   : >> { %v460_v34 = vsel %vm459_vm7, %v458_v25, %v445_v33 }
 0x555   : >> { %462 = vst [vmem:[%s461_s18] sm:$0xff] %v460_v34 }
 0x556   : > { %867 = shalt.err (!%p864_p10)
}
 0x557   : > { %s868_s4 = scalar_lea.hbm %s1173_s27, 256  ;;  %s872_s7 = scalar_lea.hbm %s1226_s2, 512 }
 0x558   : > { %p869_p4 = scmp.ne.s32.totalorder %s1173_s27, %s868_s4  ;;  %p873_p12 = scmp.lt.s32.totalorder %s1173_s27, %s1226_s2 }
 0x559   : > { %p874_p8 = scmp.lt.s32.totalorder %s872_s7, %s868_s4 }
 0x55a   : > { %p870_p13 = pnand %p869_p4, %p1027_p9 }
 0x55b   : > { %p875_p0 = por %p874_p8, %p873_p12 }
 0x55c   : > { %p871_p2 = pneg %p870_p13 }
 0x55e   : > { %p876_p1 = pnand %p875_p0, %p871_p2 }
 0x560   : > { %879 = shalt.err (!%p876_p1)
}
 0x561   : > { %s959_s16 = smov 128   ;;  %s960_s18 = smov 8  }
 0x562   : > { %742 = dma.vmem_to_hbm [thread:$0]  (%p1027_p9), %s1176_s28, 256, %s1173_s27, %s465_s29, %s959_s16, %s959_s16, %s960_s18  }
 0x563 PF: > { %s495_s19 = sand.u32 1, %s922_s9   ;;  %p1233_p3 = scmp.ge.s32.totalorder %s942_s14, 2 }
 0x564   : > { %s496_s25 = scalar_lea.sflag [#allocation7], %s495_s19 }
 0x565   : > { %p749_p5 = pnand %p1233_p3, %p1034_p11 }
 0x567   : > { %p750_p6 = pneg %p749_p5 }
 0x569   : > { %917 = dma.done.wait (%p750_p6), %s496_s25, 256  }
 0x56a   : > { %919 = vsyncadd (%p750_p6), %s496_s25, 4294967040  ;;  %s18_s14 = sadd.s32 1, %s942_s14   ;;  %s1234_s9 = smov %s926_s10 }
 0x56b   : > { %p15_p7 = scmp.ge.s32.totalorder %s18_s14, 4   ;;  %s1235_s10 = smov %s930_s11 }
 0x56c   : > { %s1236_s11 = smov %s1032_s23  ;;  %s1237_s12 = smov %s938_s13 }
 0x56d   : > { %s1238_s13 = smov %s1240_s17  ;;  %17 = sbr.rel (!%p15_p7) target bundleno = 6 (0x6), region = 115 }
 0x572   :  { %501 = vsyncpa [#allocation6], 1 }
 0x573   :  { %503 = vsyncpa [#allocation6 + $0x1], 1 }
 0x574   :  { %504 = vsyncpa [#allocation7], 1 }
 0x575   :  { %506 = vsyncpa [#allocation7 + $0x1], 1 }

// kernel: _run_kernels.2
= control target key start
LH: loop header
LB: loop body
LE: loop exit
PB: predicated region body
PF: predicated region fallthrough
CT: control target
= control target key end

     0   :  { %8 = vsyncpa [#allocation3], 0  ;;  %s896_s0 = inlined_call_operand.hbm [shape: bf16[2,16,128], index: 0, kind: input, shape index: {}]   ;;  %s897_s1 = inlined_call_operand.hbm [shape: bf16[128,128], index: 1, kind: input, shape index: {}]   ;;  %s898_s2 = inlined_call_operand.vmem [shape: f32[1,128], index: 2, kind: input, shape index: {}]   ;;  %s899_s3 = inlined_call_operand.vmem [shape: f32[2,16,128], index: 3, kind: output, shape index: {}]  }
   0x1   :  { %10 = vsyncpa [#allocation3 + $0x1], 0 }
   0x2   :  { %11 = vsyncpa [#allocation5], 0  ;;  %s761_s12 = smov 0   ;;  %s763_s13 = smov 0  }
   0x3   :  { %s765_s14 = smov 0   ;;  %s767_s15 = smov 0  }
   0x4   :  { %s769_s16 = smov 0   ;;  %s771_s17 = smov 0  }
   0x5 LB: > { %s482_s18 = sadd.s32 4294967295, %s733_s17   ;;  %p51_p0 = scmp.ne.s32.totalorder %s717_s13, %s713_s12  ;;  %s733_s17 = sphi %s771_s17, %s17_s17   ;;  %s729_s16 = sphi %s769_s16, %s909_s16   ;;  %s725_s15 = sphi %s767_s15, %s908_s15   ;;  %s721_s14 = sphi %s765_s14, %s907_s14   ;;  %s717_s13 = sphi %s763_s13, %s906_s13   ;;  %s713_s12 = sphi %s761_s12, %s905_s12  }
   0x6   : > { %p791_p1 = scmp.eq.s32.totalorder %s482_s18, 0  ;;  %p484_p2 = scmp.ge.s32.totalorder %s733_s17, 1 }
   0x7   : > { %p132_p3 = scmp.lt.s32.totalorder %s733_s17, 3  ;;  %s735_s22 = smov [#allocation4]  }
   0x8   : > { %p799_p4 = por %p791_p1, %p51_p0  ;;  %s144_s23 = sshll.u32 %s735_s22, 4  ;;  %s145_s23 = int_to_ptr.vmem [resolvable:$true] %s144_s23 }
   0x9   : > { %p803_p5 = pnand %p484_p2, %p132_p3  ;;  %s29_s25 = sadd.s32 1, %s729_s16 }
   0xa   : > { %s636_s26 = scalar_lea.vmem %s145_s23, 1024  ;;  %p644_p12 = scmp.lt.s32.totalorder %s145_s23, %s145_s23 }
   0xb   : > { %p544_p6 = pneg %p803_p5  ;;  %p637_p9 = scmp.ne.s32.totalorder %s145_s23, %s636_s26 }
   0xc   : > { %p645_p13 = scmp.lt.s32.totalorder %s636_s26, %s636_s26 }
   0xd   : > { %p811_p7 = pnand %p544_p6, %p791_p1 }
   0xe   : > { %p646_p0 = por %p645_p13, %p644_p12 }
   0xf   : > { %p627_p8 = pneg %p811_p7 }
  0x11   : > { %p639_p10 = pnand %p637_p9, %p627_p8 }
  0x13   : > { %p640_p11 = pneg %p639_p10 }
  0x15   : > { %p647_p2 = pnand %p646_p0, %p640_p11 }
  0x17   : > { %650 = shalt.err (!%p647_p2)
}
  0x18   : > { %s736_s27 = smov 64   ;;  %s737_s28 = smov 4  }
  0x19   : > { %547 = dma.hbm_to_vmem [thread:$0]  (!%p811_p7), %s897_s1, 1024, %s145_s23, [#allocation5], %s736_s27, %s736_s27, %s737_s28  }
  0x1a   : > { %p31_p3 = scmp.ge.s32.totalorder %s29_s25, 2  ;;  %s38_s4 = sadd.s32 1, %s721_s14 }
  0x1b   : > { %p45_p6 = scmp.ne.s32.totalorder %s721_s14, %s717_s13  ;;  %p46_p8 = scmp.eq.s32.totalorder %s733_s17, 0 }
  0x1c   : > { %s911_s25 = smov (%p31_p3, %s29_s25), 0  ;;  %p553_p10 = scmp.lt.s32.totalorder %s733_s17, 2 }
  0x1d   : > { %p47_p9 = por %p46_p8, %p45_p6  ;;  %s33_s5 = ssub.s32 %s729_s16, %s911_s25 }
  0x1e   : > { %s161_s6 = sand.u32 1, %s721_s14   ;;  %p36_p11 = scmp.eq.s32.totalorder %s33_s5, 0 }
  0x1f   : > { %s487_s7 = sshll.u32 %s161_s6, 3  ;;  %s507_s8 = sshll.u32 %s729_s16, 7 }
  0x20   : > { %s838_s9 = scalar_select %p36_p11, %s721_s14, %s38_s4  }
  0x21   : > { %s173_s12 = scalar_lea.hbm %s896_s0, %s507_s8  ;;  %s165_s18 = scalar_lea.vmem [#allocation2], %s487_s7 }
  0x22   : > { %s174_s22 = sshll.u32 %s165_s18, 4  ;;  %p843_p7 = pnand %p553_p10, %p47_p9  ;;  %s175_s22 = int_to_ptr.vmem [resolvable:$true] %s174_s22 }
  0x23   : > { %s162_s24 = scalar_lea.sflag [#allocation3], %s161_s6  ;;  %s664_s26 = scalar_lea.vmem %s175_s22, 128 }
  0x24   : > { %p653_p12 = pneg %p843_p7  ;;  %p665_p13 = scmp.ne.s32.totalorder %s175_s22, %s664_s26 }
  0x25   : > { %s738_s29 = smov [#allocation2]  }
  0x26   : > { %p667_p0 = pnand %p665_p13, %p653_p12  ;;  %s669_s30 = sshll.u32 %s738_s29, 4  ;;  %s670_s30 = int_to_ptr.vmem [resolvable:$false] %s669_s30 }
  0x27   : > { %s671_s4 = scalar_lea.vmem %s670_s30, 256  ;;  %p672_p3 = scmp.lt.s32.totalorder %s175_s22, %s670_s30 }
  0x28   : > { %p668_p2 = pneg %p667_p0  ;;  %p673_p6 = scmp.lt.s32.totalorder %s671_s4, %s664_s26 }
  0x2a   : > { %p674_p8 = por %p673_p6, %p672_p3 }
  0x2c   : > { %p675_p9 = pnand %p674_p8, %p668_p2 }
  0x2e   : > { %678 = shalt.err (!%p675_p9)
}
  0x2f   : > { %551 = dma.hbm_to_vmem [thread:$0]  (!%p843_p7), %s173_s12, 128, %s175_s22, %s162_s24, %s736_s27, %s736_s27, %s737_s28  }
  0x30   : > { %186 = sbr.rel (%p803_p5) target bundleno = 601 (0x259), region = 32  ;;  %s188_s5 = sand.u32 (!%p803_p5), 1, %s717_s13  }
  0x31   : > { %s857_s6 = sshll.u32 (!%p803_p5), %s188_s5, 3  ;;  %s189_s7 = scalar_lea.sflag (!%p803_p5), [#allocation3], %s188_s5 }
  0x32   : > { %s192_s8 = scalar_lea.vmem (!%p803_p5), [#allocation2], %s857_s6 }
  0x35   : > { %704 = dma.done.wait (%p799_p4), %s189_s7, 128  }
  0x36   : > { %706 = vsyncadd (%p799_p4), %s189_s7, 4294967168 }
  0x37   : > { %708 = dma.done.wait (%p791_p1), [#allocation5], 1024  }
  0x38   : > { %710 = vsyncadd (%p791_p1), [#allocation5], 4294966272  ;;  %v739_v0 = vmov 0.0   ;;  %vm740_vm0 = vmmov 0   ;;  %v608_v1 = vld [vmem:[#allocation4 + $0x38] sm:$0xff]   ;;  %v609_v2 = vld [vmem:[#allocation4 + $0x30] sm:$0xff]  }
  0x39   : > { %518 = vmatprep.subr.bf16.mxu0 %v739_v0  ;;  %534 = vmatprep.mubr.msk.bf16.mxu0 %vm740_vm0, %v739_v0  ;;  %v610_v3 = vld [vmem:[#allocation4 + $0x28] sm:$0xff]   ;;  %v611_v4 = vld [vmem:[#allocation4 + $0x20] sm:$0xff]   ;;  %v612_v5 = vld [vmem:[#allocation4 + $0x18] sm:$0xff]   ;;  %p225_p1 = scmp.lt.s32.totalorder %s725_s15, 1 }
  0x3a   : > { %519 = vmatpush3.bf16.msra.mxu0 %v608_v1  ;;  %v613_v6 = vld [vmem:[#allocation4 + $0x10] sm:$0xff]   ;;  %v614_v7 = vld [vmem:[#allocation4 + $0x8] sm:$0xff]   ;;  %v615_v8 = vld [vmem:[#allocation4] sm:$0xff]  }
  0x3b   : > { %520 = vmatprep.subr.bf16.mxu0 %v739_v0  ;;  %v616_v9 = vld [vmem:[%s192_s8] sm:$0xff]   ;;  %s913_s15 = smov (!%p225_p1, %s725_s15), 1 }
  0x3c   : > { %v495_v10 = vld [vmem:[%s898_s2] ss:$0 sm:$0xff]  ;;  %s508_s21 = sshll.u32 %s913_s15, 4 }
  0x3d   : > { %s232_s10 = scalar_lea.vmem %s899_s3, %s508_s21 }
  0x3e   : > { %521 = vmatpush3.bf16.msra.mxu0 %v609_v2 }
  0x3f   : > { %522 = vmatprep.subr.bf16.mxu0 %v739_v0 }
  0x42   : > { %523 = vmatpush3.bf16.msra.mxu0 %v610_v3 }
  0x43   : > { %524 = vmatprep.subr.bf16.mxu0 %v739_v0 }
  0x46   : > { %525 = vmatpush3.bf16.msra.mxu0 %v611_v4 }
  0x47   : > { %526 = vmatprep.subr.bf16.mxu0 %v739_v0 }
  0x4a   : > { %527 = vmatpush3.bf16.msra.mxu0 %v612_v5 }
  0x4b   : > { %528 = vmatprep.subr.bf16.mxu0 %v739_v0 }
  0x4e   : > { %529 = vmatpush3.bf16.msra.mxu0 %v613_v6 }
  0x4f   : > { %530 = vmatprep.subr.bf16.mxu0 %v739_v0 }
  0x52   : > { %531 = vmatpush3.bf16.msra.mxu0 %v614_v7 }
  0x53   : > { %532 = vmatprep.subr.bf16.mxu0 %v739_v0 }
  0x56   : > { %533 = vmatpush3.bf16.msra.mxu0 %v615_v8 }
  0x59   : > { %535 = vmatmul.mubr.bf16.vlgmr.msra.gmra.mxu0 %v616_v9 }
 0x119   : > { %v348_v11 = vpop.f32.mrf.mxu0 }
 0x11a   : > { %v349_v12 = vadd.f32 %v495_v10, %v348_v11 }
 0x11b   : > { %v536_v13 = vpop.f32.mrf.mxu0 }
 0x11c   : > { %355 = vmax.xlane.f32.xlu0 %v349_v12 }
 0x11d   : > { %v351_v14 = vpop.f32.mrf.mxu0 }
 0x11e   : > { %v352_v15 = vadd.f32 %v495_v10, %v351_v14 }
 0x11f   : > { %v537_v16 = vpop.f32.mrf.mxu0 }
 0x120   : > { %357 = vmax.xlane.f32.xlu0 %v352_v15 }
 0x1a5   : > { %v356_v17 = vpop.xlane.xlu0 %355 }
 0x1a6   : > { %v359_v18 = vsub.f32 %v349_v12, %v356_v17 }
 0x1a8   : > { %v361_v19 = vmul.f32 1.442695, %v359_v18 }
 0x1a9   : > { %v358_v20 = vpop.xlane.xlu0 %357 }
 0x1aa   : > { %v360_v21 = vsub.f32 %v352_v15, %v358_v20  ;;  %617 = vpow2.f32 %v361_v19 }
 0x1ac   : > { %v363_v22 = vmul.f32 1.442695, %v360_v21 }
 0x1ae   : > { %619 = vpow2.f32 %v363_v22 }
 0x1b7   : > { %v618_v23 = vpop.eup %617 }
 0x1b8   : > { %365 = vadd.xlane.f32.xlu1 %v618_v23 }
 0x1bb   : > { %v620_v24 = vpop.eup %619 }
 0x1bc   : > { %367 = vadd.xlane.f32.xlu1 %v620_v24 }
 0x241   : > { %v366_v25 = vpop.xlane.xlu1 %365 }
 0x242   : > { %621 = vlog2.f32 %v366_v25 }
 0x245   : > { %v368_v26 = vpop.xlane.xlu1 %367 }
 0x246   : > { %623 = vlog2.f32 %v368_v26 }
 0x24f   : > { %v622_v27 = vpop.eup %621 }
 0x250   : > { %v370_v28 = vmul.f32 0.6931472, %v622_v27 }
 0x252   : > { %v373_v29 = vsub.f32 %v359_v18, %v370_v28 }
 0x253   : > { %v624_v30 = vpop.eup %623 }
 0x254   : > { %375 = vst [vmem:[%s232_s10] sm:$0xff] %v373_v29  ;;  %v372_v31 = vmul.f32 0.6931472, %v624_v30 }
 0x256   : > { %v374_v32 = vsub.f32 %v360_v21, %v372_v31 }
 0x258   : > { %376 = vst [vmem:[%s232_s10 + $0x8] sm:$0xff] %v374_v32 }
 0x259 PF: > { %s17_s17 = sadd.s32 1, %s733_s17   ;;  %s905_s12 = smov %s717_s13 }
 0x25a   : > { %p14_p4 = scmp.ge.s32.totalorder %s17_s17, 4   ;;  %s906_s13 = smov %s721_s14 }
 0x25b   : > { %s907_s14 = smov %s838_s9  ;;  %s908_s15 = smov %s729_s16 }
 0x25c   : > { %s909_s16 = smov %s911_s25  ;;  %16 = sbr.rel (!%p14_p4) target bundleno = 5 (0x5), region = 76 }
 0x261   :  { %407 = vsyncpa [#allocation3], 1 }
 0x262   :  { %409 = vsyncpa [#allocation3 + $0x1], 1 }
 0x263   :  { %410 = vsyncpa [#allocation5], 1 }

</bundles_post_ra>
